<compile_context>
chip_gen: v6e
topology: v6e:2x2x1
jax: 0.10.0
libtpu: 0.0.40
codegen_flags: <defaults>
</compile_context>

<pallas_src>
import jax
import jax.numpy as jnp
from jax.experimental import pallas as pl
from jax.experimental.pallas import tpu as pltpu


# ----------------------------------------------------------------------------
# Hardware-aware sizing helpers
# ----------------------------------------------------------------------------

def _vmem_capacity_bytes():
    """Per-TensorCore VMEM capacity; falls back to the smallest current
    generation (v7x: 64 MiB) if the query is unavailable."""
    try:
        return int(pltpu.get_tpu_info().vmem_capacity_bytes)
    except Exception:
        return 64 << 20


def _is_v7x():
    try:
        return "v7" in jax.devices()[0].device_kind.lower()
    except Exception:
        return False


def _single_pass_cost(C, HW, itemsize):
    """Honest VMEM estimate for the fused path: double-buffered x + out blocks
    (io dtype), ~2 full-block f32 working copies (the in-register upcast of x
    and one elementwise temporary), small (8,128)-padded weight tiles, and
    fixed headroom for compiler-internal scratch."""
    io_blk = C * HW * itemsize
    f32_blk = C * HW * 4
    return 4 * io_blk + 2 * f32_blk + 8 * 8 * 128 * 4 + (2 << 20)


def _pick_hw_tile(HW, C, itemsize, budget):
    """Largest lane-dense (multiple-of-128) HW tile whose double-buffered
    in/out blocks plus f32 working copies fit `budget`.  The fallback grid
    uses pl.cdiv(HW, tile), so HW need not be divisible by the tile: edge
    blocks are padded, and because the apply kernel is elementwise along HW
    (the squeeze reduce is over C, per column) padding columns never
    contaminate valid columns and padded stores are masked out."""
    hw_pad = -(-HW // 128) * 128
    per_col = C * (4 * itemsize + 2 * 4)            # VMEM bytes per HW column
    avail = max(budget - (2 << 20), per_col * 128)
    t = (avail // per_col) // 128 * 128
    return int(max(128, min(t, hw_pad)))


# ----------------------------------------------------------------------------
# Kernels
# ----------------------------------------------------------------------------

def _scse_fused_kernel(x_ref, wsq_ref, w1_ref, b1_ref, w2_ref, b2_ref, o_ref):
    # Single pass: the x block spans the FULL spatial extent (required for the
    # channel-gate mean below -- the wrapper guarantees block HW == full HW).
    x = x_ref[0].astype(jnp.float32)                                 # (C, HW)
    inv_hw = 1.0 / x.shape[1]

    # ---- Spatial gate (SpatialAttention2d): 1x1 conv C->1, no bias ----
    # VPU mul + sublane-axis reduce instead of an M=1 MXU GEMM (which would
    # run the MXU at ~1/256 efficiency and reload x as weights tile-by-tile).
    s = jax.nn.sigmoid(
        jnp.sum(x * wsq_ref[...], axis=0, keepdims=True))            # (1, HW)

    # ---- Channel gate (GAB): global avg pool + tiny bottleneck MLP ----
    # f32 accumulation (x already upcast above).
    mean = jnp.sum(x, axis=1, keepdims=True) * inv_hw                # (C, 1)
    z = jnp.dot(w1_ref[...], mean,
                preferred_element_type=jnp.float32) + b1_ref[...]    # (Cr, 1)
    z = jnp.maximum(z, 0.0)
    z = jnp.dot(w2_ref[...], z,
                preferred_element_type=jnp.float32) + b2_ref[...]    # (C, 1)
    z = jax.nn.sigmoid(z)

    # ---- Fused apply: x*sig(s) + x*z == x * (sig(s) + z) ----
    # (1,HW) broadcasts over sublanes, (C,1) broadcasts over lanes.
    o_ref[0] = (x * (s + z)).astype(o_ref.dtype)


def _scse_apply_kernel(x_ref, wsq_ref, zc_ref, o_ref):
    # Tiled fallback apply: the spatial gate is per-pixel so it tiles over HW;
    # the channel gate zc (C,1) was precomputed per batch.
    x = x_ref[0].astype(jnp.float32)                                 # (C, T)
    s = jax.nn.sigmoid(
        jnp.sum(x * wsq_ref[...], axis=0, keepdims=True))            # (1, T)
    o_ref[0] = (x * (s + zc_ref[0])).astype(o_ref.dtype)


# ----------------------------------------------------------------------------
# Wrapper
# ----------------------------------------------------------------------------

def scse_pallas(x_nchw, w_sq, w1, b1, w2, b2, path="auto"):
    """x_nchw: (B, C, H, W) float32 or bfloat16.
       w_sq: (1, C); w1: (Cr, C); b1: (Cr,); w2: (C, Cr); b2: (C,).
       path: "auto" | "fused" | "tiled"."""
    assert x_nchw.ndim == 4
    B, C, H, W = x_nchw.shape
    HW = H * W
    Cr = w1.shape[0]
    itemsize = jnp.dtype(x_nchw.dtype).itemsize

    # NCHW -> (B, C, HW): pure reshape, no transpose / no extra HBM traffic.
    x = x_nchw.reshape(B, C, HW)

    # Tiny parameters: keep/cast to f32 so all gate math runs in f32.
    wsq_col = w_sq.reshape(C, 1).astype(jnp.float32)   # column: lane-broadcasts
    w1f = w1.astype(jnp.float32)
    w2f = w2.astype(jnp.float32)
    b1c = b1.reshape(Cr, 1).astype(jnp.float32)
    b2c = b2.reshape(C, 1).astype(jnp.float32)

    cap = _vmem_capacity_bytes()
    budget = int(cap * 0.75)          # decision budget
    vmem_limit = int(cap * 0.85)      # scoped limit handed to the compiler

    need = _single_pass_cost(C, HW, itemsize)
    tile = _pick_hw_tile(HW, C, itemsize, budget)

    if path == "fused":
        use_fused = True
    elif path == "tiled":
        use_fused = False
    else:
        use_fused = need <= budget
        if use_fused and _is_v7x() and B < 4:
            # v7x: 2 TensorCores, grid=(B,) with B<4 leaves a core idle and the
            # per-batch multi-MiB DMA exposed; prefer the tiled path when it
            # yields enough steps to pipeline / feed both cores.
            if B * pl.cdiv(HW, tile) >= 8:
                use_fused = False

    if use_fused:
        # Single pass over x: 1 HBM read + 1 HBM write, whole-HW per-batch
        # block (the in-kernel mean relies on the block spanning the full HW).
        out = pl.pallas_call(
            _scse_fused_kernel,
            out_shape=jax.ShapeDtypeStruct((B, C, HW), x.dtype),
            grid_spec=pltpu.PrefetchScalarGridSpec(
                num_scalar_prefetch=0,
                grid=(B,),
                in_specs=[
                    pl.BlockSpec((1, C, HW), lambda b: (b, 0, 0)),  # x
                    pl.BlockSpec((C, 1), lambda b: (0, 0)),         # squeeze w
                    pl.BlockSpec((Cr, C), lambda b: (0, 0)),        # conv1 w
                    pl.BlockSpec((Cr, 1), lambda b: (0, 0)),        # conv1 b
                    pl.BlockSpec((C, Cr), lambda b: (0, 0)),        # conv2 w
                    pl.BlockSpec((C, 1), lambda b: (0, 0)),         # conv2 b
                ],
                out_specs=pl.BlockSpec((1, C, HW), lambda b: (b, 0, 0)),
            ),
            compiler_params=pltpu.CompilerParams(
                dimension_semantics=("parallel",),
                vmem_limit_bytes=vmem_limit),
            input_output_aliases={0: 0},   # out overwrites x's HBM buffer
        )(x, wsq_col, w1f, b1c, w2f, b2c)
    else:
        # Two-pass fallback (large feature maps / v7x small batch).
        # Pass 1: channel gate needs the full-HW mean; the reduce + tiny MLP
        # is negligible work done in plain JAX (f32 accumulation; costs one
        # extra HBM read of x).
        mean = jnp.mean(x, axis=-1, dtype=jnp.float32)               # (B, C)
        zc = jnp.maximum(mean @ w1f.T + b1c[:, 0], 0.0)              # (B, Cr)
        zc = jax.nn.sigmoid(zc @ w2f.T + b2c[:, 0])                  # (B, C)
        zc = zc[..., None]                                           # (B, C, 1) f32

        # Pass 2: tiled, lane-dense apply.  Edge blocks along HW are padded
        # (grid uses cdiv); padded columns are elementwise-isolated and their
        # stores are masked, so correctness is unaffected.
        # Note: default double-buffering; pl.Buffered(3) on the x spec is a
        # further knob if profiles show exposed DMA at v7x-sized tiles.
        out = pl.pallas_call(
            _scse_apply_kernel,
            out_shape=jax.ShapeDtypeStruct((B, C, HW), x.dtype),
            grid_spec=pltpu.PrefetchScalarGridSpec(
                num_scalar_prefetch=0,
                grid=(B, pl.cdiv(HW, tile)),
                in_specs=[
                    pl.BlockSpec((1, C, tile), lambda b, t: (b, 0, t)),
                    pl.BlockSpec((C, 1), lambda b, t: (0, 0)),
                    pl.BlockSpec((1, C, 1), lambda b, t: (b, 0, 0)),
                ],
                out_specs=pl.BlockSpec((1, C, tile), lambda b, t: (b, 0, t)),
            ),
            compiler_params=pltpu.CompilerParams(
                dimension_semantics=("parallel", "parallel"),
                vmem_limit_bytes=vmem_limit),
            input_output_aliases={0: 0},
        )(x, wsq_col, zc)

    # (B, C, HW) -> NCHW: free reshape.
    return out.reshape(B, C, H, W)


# ----------------------------------------------------------------------------
# Pure-JAX reference (mirrors the PyTorch forward, NCHW)
# ----------------------------------------------------------------------------

def scse_reference(x_nchw, w_sq, w1, b1, w2, b2):
    x = x_nchw.astype(jnp.float32)
    # spatial attention: 1x1 conv C->1 (no bias)
    s = jnp.einsum("bchw,c->bhw", x, w_sq[0].astype(jnp.float32))
    s = jax.nn.sigmoid(s)[:, None, :, :]
    satt = x * s
    # channel attention
    z = jnp.mean(x, axis=(2, 3))
    z = jnp.maximum(z @ w1.T + b1, 0.0)
    z = jax.nn.sigmoid(z @ w2.T + b2)
    catt = x * z[:, :, None, None]
    return satt + catt


# ----------------------------------------------------------------------------
# Self-test
# ----------------------------------------------------------------------------

def _make_params(key, C, Cr):
    k_sq, k_w1, k_b1, k_w2, k_b2 = jax.random.split(key, 5)
    w_sq = jax.random.normal(k_sq, (1, C), dtype=jnp.float32) * 0.5
    w1 = jax.random.normal(k_w1, (Cr, C), dtype=jnp.float32) * 0.5
    b1 = jax.random.normal(k_b1, (Cr,), dtype=jnp.float32) * 0.1
    w2 = jax.random.normal(k_w2, (C, Cr), dtype=jnp.float32) * 0.5
    b2 = jax.random.normal(k_b2, (C,), dtype=jnp.float32) * 0.1
    return w_sq, w1, b1, w2, b2


if __name__ == "__main__":
    key = jax.random.PRNGKey(0)
    k1, k2, k3, kp1, kp2 = jax.random.split(key, 5)

    # --- Test 1: fused single-pass path, f32 ---
    B, C, H, W, red = 2, 4, 16, 16, 4
    Cr = C // red
    x1 = jax.random.normal(k1, (B, C, H, W), dtype=jnp.float32)
    p1 = _make_params(kp1, C, Cr)
    out1 = jax.block_until_ready(scse_pallas(x1, *p1, path="fused"))
    ref1 = scse_reference(x1, *p1)
    assert out1.shape == (B, C, H, W)
    assert jnp.allclose(out1, ref1, atol=1e-5, rtol=1e-5), (
        f"fused path: max abs err {jnp.max(jnp.abs(out1 - ref1))}")

    # --- Test 2: tiled fallback path, f32, HW not a multiple of 128 ---
    B2, C2, H2, W2, red2 = 2, 8, 14, 14, 4      # HW = 196 -> padded edge block
    Cr2 = C2 // red2
    x2 = jax.random.normal(k2, (B2, C2, H2, W2), dtype=jnp.float32)
    p2 = _make_params(kp2, C2, Cr2)
    out2 = jax.block_until_ready(scse_pallas(x2, *p2, path="tiled"))
    ref2 = scse_reference(x2, *p2)
    assert out2.shape == (B2, C2, H2, W2)
    assert jnp.allclose(out2, ref2, atol=1e-5, rtol=1e-5), (
        f"tiled path: max abs err {jnp.max(jnp.abs(out2 - ref2))}")

    # --- Test 3: bf16 I/O, auto path (f32 compute inside the kernel) ---
    x3 = jax.random.normal(k3, (B, C, H, W), dtype=jnp.float32).astype(jnp.bfloat16)
    out3 = jax.block_until_ready(scse_pallas(x3, *p1, path="auto"))
    ref3 = scse_reference(x3, *p1)
    assert out3.dtype == jnp.bfloat16
    assert jnp.allclose(out3.astype(jnp.float32), ref3, atol=2e-2, rtol=2e-2), (
        f"bf16 path: max abs err {jnp.max(jnp.abs(out3.astype(jnp.float32) - ref3))}")

    print("KERNEL_OK")
</pallas_src>

<mosaic_0001>
module attributes {stable_mosaic.version = 11 : i64} {
  func.func @_scse_fused_kernel(%arg0: i32, %arg1: memref<1x4x256xf32, #tpu.memory_space<vmem>>, %arg2: memref<4x1xf32, #tpu.memory_space<vmem>>, %arg3: memref<1x4xf32, #tpu.memory_space<vmem>>, %arg4: memref<1x1xf32, #tpu.memory_space<vmem>>, %arg5: memref<4x1xf32, #tpu.memory_space<vmem>>, %arg6: memref<4x1xf32, #tpu.memory_space<vmem>>, %arg7: memref<1x4x256xf32, #tpu.memory_space<vmem>>) attributes {dimension_semantics = [#tpu.dimension_semantics<parallel>], iteration_bounds = array<i64: 2>, scalar_prefetch = 0 : i64, scratch_operands = 0 : i64, tpu.core_type = #tpu.core_type<tc>, window_params = [{transform_indices = @transform_0, window_bounds = array<i64: 1, 4, 256>}, {pipeline_mode = #tpu.pipeline_mode<synchronous>, transform_indices = @transform_1, window_bounds = array<i64: 4, 1>}, {pipeline_mode = #tpu.pipeline_mode<synchronous>, transform_indices = @transform_2, window_bounds = array<i64: 1, 4>}, {pipeline_mode = #tpu.pipeline_mode<synchronous>, transform_indices = @transform_3, window_bounds = array<i64: 1, 1>}, {pipeline_mode = #tpu.pipeline_mode<synchronous>, transform_indices = @transform_4, window_bounds = array<i64: 4, 1>}, {pipeline_mode = #tpu.pipeline_mode<synchronous>, transform_indices = @transform_5, window_bounds = array<i64: 4, 1>}, {transform_indices = @transform_6, window_bounds = array<i64: 1, 4, 256>}]} {
    %c0 = arith.constant 0 : index
    %c0_0 = arith.constant 0 : index
    %c0_1 = arith.constant 0 : index
    %0 = vector.load %arg1[%c0, %c0_0, %c0_1] : memref<1x4x256xf32, #tpu.memory_space<vmem>>, vector<1x4x256xf32>
    %1 = vector.shape_cast %0 : vector<1x4x256xf32> to vector<4x256xf32>
    %c0_2 = arith.constant 0 : index
    %c0_3 = arith.constant 0 : index
    %2 = vector.load %arg2[%c0_2, %c0_3] : memref<4x1xf32, #tpu.memory_space<vmem>>, vector<4x1xf32>
    %3 = vector.broadcast %2 : vector<4x1xf32> to vector<4x256xf32>
    %4 = arith.mulf %1, %3 : vector<4x256xf32>
    %cst = arith.constant dense<0.000000e+00> : vector<256xf32>
    %5 = vector.multi_reduction <add>, %4, %cst [0] : vector<4x256xf32> to vector<256xf32>
    %6 = vector.shape_cast %5 : vector<256xf32> to vector<1x256xf32>
    %7 = arith.negf %6 : vector<1x256xf32>
    %8 = math.exp %7 : vector<1x256xf32>
    %cst_4 = arith.constant 1.000000e+00 : f32
    %9 = vector.broadcast %cst_4 : f32 to vector<1x256xf32>
    %10 = arith.addf %9, %8 : vector<1x256xf32>
    %11 = arith.divf %9, %10 : vector<1x256xf32>
    %cst_5 = arith.constant dense<0.000000e+00> : vector<4xf32>
    %12 = vector.multi_reduction <add>, %1, %cst_5 [1] : vector<4x256xf32> to vector<4xf32>
    %13 = vector.shape_cast %12 : vector<4xf32> to vector<4x1xf32>
    %cst_6 = arith.constant 3.906250e-03 : f32
    %14 = vector.broadcast %cst_6 : f32 to vector<4x1xf32>
    %15 = arith.mulf %13, %14 : vector<4x1xf32>
    %c0_7 = arith.constant 0 : index
    %c0_8 = arith.constant 0 : index
    %16 = vector.load %arg3[%c0_7, %c0_8] : memref<1x4xf32, #tpu.memory_space<vmem>>, vector<1x4xf32>
    %cst_9 = arith.constant dense<0.000000e+00> : vector<1x1xf32>
    %17 = tpu.matmul %16, %15, %cst_9 {dimension_numbers = #tpu.dot_dimension_numbers<[1], [0], [0], [1], [0, 0, 1, 1], [], []>} : vector<1x4xf32>, vector<4x1xf32>, vector<1x1xf32> -> vector<1x1xf32>
    %c0_10 = arith.constant 0 : index
    %c0_11 = arith.constant 0 : index
    %18 = vector.load %arg4[%c0_10, %c0_11] : memref<1x1xf32, #tpu.memory_space<vmem>>, vector<1x1xf32>
    %19 = arith.addf %17, %18 : vector<1x1xf32>
    %cst_12 = arith.constant 0.000000e+00 : f32
    %20 = vector.broadcast %cst_12 : f32 to vector<1x1xf32>
    %21 = arith.maximumf %19, %20 : vector<1x1xf32>
    %c0_13 = arith.constant 0 : index
    %c0_14 = arith.constant 0 : index
    %22 = vector.load %arg5[%c0_13, %c0_14] : memref<4x1xf32, #tpu.memory_space<vmem>>, vector<4x1xf32>
    %cst_15 = arith.constant dense<0.000000e+00> : vector<4x1xf32>
    %23 = tpu.matmul %22, %21, %cst_15 {dimension_numbers = #tpu.dot_dimension_numbers<[1], [0], [0], [1], [0, 0, 1, 1], [], []>} : vector<4x1xf32>, vector<1x1xf32>, vector<4x1xf32> -> vector<4x1xf32>
    %c0_16 = arith.constant 0 : index
    %c0_17 = arith.constant 0 : index
    %24 = vector.load %arg6[%c0_16, %c0_17] : memref<4x1xf32, #tpu.memory_space<vmem>>, vector<4x1xf32>
    %25 = arith.addf %23, %24 : vector<4x1xf32>
    %26 = arith.negf %25 : vector<4x1xf32>
    %27 = math.exp %26 : vector<4x1xf32>
    %cst_18 = arith.constant 1.000000e+00 : f32
    %28 = vector.broadcast %cst_18 : f32 to vector<4x1xf32>
    %29 = arith.addf %28, %27 : vector<4x1xf32>
    %30 = arith.divf %28, %29 : vector<4x1xf32>
    %31 = vector.broadcast %11 : vector<1x256xf32> to vector<4x256xf32>
    %32 = vector.broadcast %30 : vector<4x1xf32> to vector<4x256xf32>
    %33 = arith.addf %31, %32 : vector<4x256xf32>
    %34 = arith.mulf %1, %33 : vector<4x256xf32>
    %c0_19 = arith.constant 0 : index
    %c0_20 = arith.constant 0 : index
    %c0_21 = arith.constant 0 : index
    %35 = vector.load %arg7[%c0_19, %c0_20, %c0_21] : memref<1x4x256xf32, #tpu.memory_space<vmem>>, vector<1x4x256xf32>
    %36 = vector.shape_cast %35 : vector<1x4x256xf32> to vector<4x256xf32>
    %37 = vector.shape_cast %34 : vector<4x256xf32> to vector<1x4x256xf32>
    tpu.vector_store %arg7[%c0_19, %c0_20, %c0_21], %37 {strides = array<i32>} : memref<1x4x256xf32, #tpu.memory_space<vmem>>, vector<1x4x256xf32>,
    return
  }
  func.func @transform_0(%arg0: i32) -> (i32, i32, i32) {
    %c0_i32 = arith.constant 0 : i32
    %c0_i32_0 = arith.constant 0 : i32
    %c0_i32_1 = arith.constant 0 : i32
    return %arg0, %c0_i32, %c0_i32_0 : i32, i32, i32
  }
  func.func @transform_1(%arg0: i32) -> (i32, i32) {
    %c0_i32 = arith.constant 0 : i32
    %c0_i32_0 = arith.constant 0 : i32
    %c0_i32_1 = arith.constant 0 : i32
    return %c0_i32, %c0_i32_0 : i32, i32
  }
  func.func @transform_2(%arg0: i32) -> (i32, i32) {
    %c0_i32 = arith.constant 0 : i32
    %c0_i32_0 = arith.constant 0 : i32
    %c0_i32_1 = arith.constant 0 : i32
    return %c0_i32, %c0_i32_0 : i32, i32
  }
  func.func @transform_3(%arg0: i32) -> (i32, i32) {
    %c0_i32 = arith.constant 0 : i32
    %c0_i32_0 = arith.constant 0 : i32
    %c0_i32_1 = arith.constant 0 : i32
    return %c0_i32, %c0_i32_0 : i32, i32
  }
  func.func @transform_4(%arg0: i32) -> (i32, i32) {
    %c0_i32 = arith.constant 0 : i32
    %c0_i32_0 = arith.constant 0 : i32
    %c0_i32_1 = arith.constant 0 : i32
    return %c0_i32, %c0_i32_0 : i32, i32
  }
  func.func @transform_5(%arg0: i32) -> (i32, i32) {
    %c0_i32 = arith.constant 0 : i32
    %c0_i32_0 = arith.constant 0 : i32
    %c0_i32_1 = arith.constant 0 : i32
    return %c0_i32, %c0_i32_0 : i32, i32
  }
  func.func @transform_6(%arg0: i32) -> (i32, i32, i32) {
    %c0_i32 = arith.constant 0 : i32
    %c0_i32_0 = arith.constant 0 : i32
    %c0_i32_1 = arith.constant 0 : i32
    return %arg0, %c0_i32, %c0_i32_0 : i32, i32, i32
  }
}

</mosaic_0001>

<bundles_post_ra>
// kernel: tpu_custom_call.1
= control target key start
LH: loop header
LB: loop body
LE: loop exit
PB: predicated region body
PF: predicated region fallthrough
CT: control target
= control target key end

     0   :  { %s997_s0 = inlined_call_operand.hbm [shape: f32[2,4,256], index: 0, kind: input, shape index: {}, may-alias: {0,6}]   ;;  %s998_s1 = inlined_call_operand.vmem [shape: f32[4,1], index: 1, kind: input, shape index: {}]   ;;  %s999_s2 = inlined_call_operand.vmem [shape: f32[1,4], index: 2, kind: input, shape index: {}]   ;;  %s1000_s3 = inlined_call_operand.<no memory space> [shape: f32[1,1], index: 3, kind: input, shape index: {}]   ;;  %s1001_s4 = inlined_call_operand.vmem [shape: f32[4,1], index: 4, kind: input, shape index: {}]   ;;  %s1002_s5 = inlined_call_operand.vmem [shape: f32[4,1], index: 5, kind: input, shape index: {}]   ;;  %s1003_s6 = inlined_call_operand.hbm [shape: f32[2,4,256], index: 6, kind: output, shape index: {}, may-alias: {0,6}]  }
   0x1   :  { %v11_v0 = vstv %s1000_s3 }
   0x2   :  { %12 = vst [vmem:[#allocation2] sm:$0x1] %v11_v0 }
   0x3   :  { %13 = vsyncpa [#allocation4], 0 }
   0x4   :  { %15 = vsyncpa [#allocation4 + $0x1], 0 }
   0x5   :  { %16 = vsyncpa [#allocation5], 0 }
   0x6   :  { %18 = vsyncpa [#allocation5 + $0x1], 0  ;;  %s828_s23 = smov 0   ;;  %s830_s24 = smov 0  }
   0x7   :  { %s832_s25 = smov 0   ;;  %s834_s26 = smov 0  }
   0x8 LB: > { %s849_s3 = sadd.s32 4294967295, %s782_s26   ;;  %s588_s27 = sadd.s32 4294967294, %s782_s26   ;;  %s782_s26 = sphi %s834_s26, %s1020_s26   ;;  %s778_s25 = sphi %s832_s25, %s1019_s25   ;;  %s774_s24 = sphi %s830_s24, %s1018_s24   ;;  %s770_s23 = sphi %s828_s23, %s1017_s23  }
   0x9   : > { %s853_s28 = sadd.s32 1, %s782_s26   ;;  %s31_s29 = sadd.s32 1, %s778_s25 }
   0xa   : > { %s28_s30 = ssub.s32 %s782_s26, %s853_s28  ;;  %p38_p0 = scmp.ne.s32.totalorder %s778_s25, %s774_s24 }
   0xb   : > { %p29_p1 = scmp.eq.s32.totalorder %s28_s30, 0  ;;  %p39_p2 = scmp.eq.s32.totalorder %s782_s26, 0 }
   0xc   : > { %p44_p3 = scmp.ne.s32.totalorder %s774_s24, %s770_s23  ;;  %p45_p4 = scmp.eq.s32.totalorder %s849_s3, 0 }
   0xd   : > { %s865_s7 = scalar_select %p29_p1, %s778_s25, %s31_s29  }
   0xe   : > { %p867_p5 = por %p39_p2, %p38_p0  ;;  %p871_p6 = por %p45_p4, %p44_p3 }
   0xf   : > { %p173_p7 = scmp.eq.s32.totalorder %s849_s3, 1  ;;  %p179_p8 = scmp.eq.s32.totalorder %s588_s27, 1 }
  0x10   : > { %s1007_s9 = scalar_select %p871_p6, 1, 0 }
  0x11   : > { %p637_p10 = scmp.lt.s32.totalorder %s782_s26, 2  ;;  %p878_p11 = por %p173_p7, %p38_p0 }
  0x12   : > { %p882_p12 = por %p179_p8, %p44_p3  ;;  %s214_s12 = sand.u32 1, %s778_s25  }
  0x13   : > { %s1008_s10 = scalar_select %p878_p11, 1, 0 }
  0x14   : > { %s1009_s11 = scalar_select %p882_p12, 1, 0 }
  0x15   : > { %s609_s13 = sshll.u32 %s782_s26, 7  ;;  %s591_s14 = sshll.u32 %s214_s12, 3 }
  0x16   : > { %s891_s17 = scalar_lea.hbm %s997_s0, %s609_s13  ;;  %s218_s18 = scalar_lea.vmem [#allocation3], %s591_s14 }
  0x17   : > { %s226_s19 = sshll.u32 %s218_s18, 4  ;;  %p895_p13 = pnand %p637_p10, %p867_p5  ;;  %s899_s19 = int_to_ptr.vmem [resolvable:$true] %s226_s19 }
  0x18   : > { %s215_s21 = scalar_lea.sflag [#allocation4], %s214_s12  ;;  %s690_s22 = scalar_lea.hbm %s891_s17, 128 }
  0x19   : > { %p691_p2 = scmp.ne.s32.totalorder %s891_s17, %s690_s22  ;;  %p692_p3 = pneg %p895_p13 }
  0x1a   : > { %s695_s30 = scalar_lea.hbm %s997_s0, 256  ;;  %p696_p5 = scmp.lt.s32.totalorder %s891_s17, %s997_s0 }
  0x1b   : > { %p693_p4 = pnand %p692_p3, %p691_p2  ;;  %p697_p8 = scmp.lt.s32.totalorder %s695_s30, %s690_s22 }
  0x1d   : > { %p694_p7 = pneg %p693_p4  ;;  %p698_p10 = por %p697_p8, %p696_p5 }
  0x1f   : > { %p699_p9 = pnand %p698_p10, %p694_p7 }
  0x21   : > { %702 = shalt.err (!%p699_p9)
}
  0x22   : > { %s703_s12 = scalar_lea.vmem %s899_s19, 128  ;;  %s784_s14 = smov [#allocation3]  }
  0x23   : > { %p704_p0 = scmp.ne.s32.totalorder %s899_s19, %s703_s12  ;;  %s708_s15 = sshll.u32 %s784_s14, 4  ;;  %s709_s15 = int_to_ptr.vmem [resolvable:$false] %s708_s15 }
  0x24   : > { %s710_s16 = scalar_lea.vmem %s709_s15, 256  ;;  %p711_p4 = scmp.lt.s32.totalorder %s899_s19, %s709_s15 }
  0x25   : > { %p706_p1 = pnand %p704_p0, %p692_p3  ;;  %p712_p12 = scmp.lt.s32.totalorder %s710_s16, %s703_s12 }
  0x27   : > { %p707_p2 = pneg %p706_p1  ;;  %p713_p11 = por %p712_p12, %p711_p4 }
  0x29   : > { %p714_p6 = pnand %p713_p11, %p707_p2 }
  0x2b   : > { %717 = shalt.err (!%p714_p6)
}
  0x2c   : > { %632 = dma.hbm_to_vmem [thread:$0]  (!%p895_p13), %s891_s17, 128, %s899_s19, %s215_s21  }
  0x2d   : > { %p1011_p9 = scmp.lt.s32.totalorder %s782_s26, 3  ;;  %p1012_p7 = scmp.ge.s32.totalorder %s782_s26, 1 }
  0x2f   : > { %p232_p0 = pnand %p1012_p7, %p1011_p9 }
  0x30   : > { %s926_s18 = sand.u32 (!%p232_p0), 1, %s774_s24   ;;  %p1013_p6 = scmp.ne.s32.totalorder (!%p232_p0), %s1007_s9, 0 }
  0x31   : > { %235 = sbr.rel (%p232_p0) target bundleno = 770 (0x302), region = 44  ;;  %s595_s22 = sshll.u32 (!%p232_p0), %s926_s18, 3 }
  0x32   : > { %s238_s27 = scalar_lea.sflag (!%p232_p0), [#allocation4], %s926_s18  ;;  %s241_s20 = scalar_lea.vmem (!%p232_p0), [#allocation3], %s595_s22 }
  0x36   : > { %761 = dma.done.wait (%p1013_p6), %s238_s27, 128  }
  0x37   : > { %763 = vsyncadd (%p1013_p6), %s238_s27, 4294967168  ;;  %vm288_vm0 = vcmask 1043456   ;;  %v936_v1 = vld [vmem:[%s241_s20] sm:$0xff]  ;;  %v785_v6 = vmov 0.0   ;;  %vm786_vm1 = vmmov 0   ;;  %vm326_vm2 = vcmask 31744  }
  0x38   : > { %v316_v2 = vcombine.high %v936_v1, %v936_v1  ;;  %v318_v3 = vsel %vm288_vm0, %v936_v1, 0.0  ;;  %615 = vmatprep.subr.mxu0 %v785_v6  ;;  %620 = vmatprep.subr.mxu1 %v785_v6  ;;  %v324_v9 = vld [vmem:[%s999_s2] sm:$0x1]  ;;  %v787_v11 = vmov 0   ;;  %vm410_vm3 = vcmask 1040384   ;;  %s610_s12 = sshll.u32 %s849_s3, 7 }
  0x39   : > { %617 = vmatprep.mubr.msk.f32.mxu0 %vm786_vm1, %v785_v6  ;;  %622 = vmatprep.mubr.msk.f32.mxu1 %vm786_vm1, %v785_v6  ;;  %v271_v10 = vld [vmem:[%s998_s1] sm:$0xf]  ;;  %vm406_vm4 = vcmask 7168   ;;  %v788_v26 = vmov 839922192   ;;  %v279_v28 = vlaneseq  ;;  %s269_s14 = scalar_lea.vmem [#allocation6], %s595_s22  ;;  %s516_s20 = scalar_lea.hbm %s1003_s6, %s610_s12 }
  0x3a   : > { %v319_v4 = vsel %vm288_vm0, %v316_v2, 0.0  ;;  %675 = vset.pattern.permute.xlu0 %v787_v11  ;;  %676 = vset.pattern.permute.xlu1 %v787_v11  ;;  %v325_v12 = vld [vmem:[#allocation2] sm:$0x1]  ;;  %v277_v27 = vunpack.c.l.s4 %v788_v26  ;;  %s518_s15 = sshll.u32 %s269_s14, 4  ;;  %s504_s9 = scalar_lea.sflag [#allocation5], %s926_s18  ;;  %s519_s15 = int_to_ptr.vmem [resolvable:$true] %s518_s15 }
  0x3b   : > { %v320_v5 = vadd.f32 %v319_v4, %v318_v3  ;;  %v404_v17 = vld [vmem:[%s1001_s4] sm:$0xf]  ;;  %v280_v30 = vshrl.u32 %v279_v28, 7  ;;  %s718_s17 = scalar_lea.vmem %s519_s15, 128  ;;  %p1014_p12 = scmp.ne.s32.totalorder %s1008_s10, 0 }
  0x3c   : > { %v405_v18 = vld [vmem:[%s1002_s5] sm:$0xf]  ;;  %v278_v29 = vunpack.c.0.s8 %v277_v27  ;;  %p719_p11 = scmp.ne.s32.totalorder %s519_s15, %s718_s17  ;;  %s789_s19 = smov [#allocation6]  }
  0x3d   : > { %321 = vadd.xlane.f32.xlu0 %v320_v5  ;;  %s722_s3 = sshll.u32 %s789_s19, 4  ;;  %s723_s3 = int_to_ptr.vmem [resolvable:$false] %s722_s3 }
  0x3e   : > { %v281_v31 = vsub.s32 %v278_v29, %v280_v30  ;;  %p720_p13 = pnand %p719_p11, %p1014_p12  ;;  %s724_s22 = scalar_lea.vmem %s723_s3, 256 }
  0x3f   : > { %p725_p3 = scmp.lt.s32.totalorder %s519_s15, %s723_s3  ;;  %p726_p5 = scmp.lt.s32.totalorder %s724_s22, %s718_s17 }
  0x40   : > { %p721_p1 = pneg %p720_p13 }
  0x41   : > { %p727_p8 = por %p726_p5, %p725_p3 }
  0x43   : > { %p728_p10 = pnand %p727_p8, %p721_p1 }
  0x53   : > { %274 = vperm.xlu0 %675, %v271_v10  }
  0xc6   : > { %v322_v7 = vpop.xlane.xlu0 %321 }
  0xc7   : > { %v323_v8 = vmul.f32 0.00390625, %v322_v7 }
  0xc9   : > { %616 = vmatpush3.msk.msra.mxu0 %vm288_vm0, %v323_v8 }
  0xca   : > { %618 = vmatmul.mubr.msk.f32.vlgmr.msra.gmra.mxu0 %vm326_vm2, %v324_v9 }
  0xce   : > { %v275_v32 = vpop.permute.xlu0 %274 }
  0xcf   : > { %v282_v33 = vrot.slane %v275_v32, %v281_v31 }
  0xd1   : > { %v284_v34 = vmul.f32 %v282_v33, %v936_v1 }
  0xd3   : > { %v286_v35 = vcombine.high %v284_v34, %v284_v34  ;;  %v289_v36 = vsel %vm288_vm0, %v284_v34, 0.0 }
  0xd4   : > { %v290_v38 = vrot.slane %v289_v36, 4 }
  0xd5   : > { %v296_v37 = vsel %vm288_vm0, %v286_v35, 0.0 }
  0xd6   : > { %v297_v39 = vrot.slane %v296_v37, 4  ;;  %v291_v40 = vadd.f32 %v290_v38, %v289_v36 }
  0xd8   : > { %v298_v41 = vadd.f32 %v297_v39, %v296_v37  ;;  %v292_v42 = vrot.slane %v291_v40, 2 }
  0xda   : > { %v299_v43 = vrot.slane %v298_v41, 2  ;;  %v293_v44 = vadd.f32 %v292_v42, %v291_v40 }
  0xdc   : > { %v300_v45 = vadd.f32 %v299_v43, %v298_v41  ;;  %v294_v46 = vrot.slane %v293_v44, 1 }
  0xde   : > { %v301_v47 = vrot.slane %v300_v45, 1  ;;  %v295_v48 = vadd.f32 %v294_v46, %v293_v44 }
  0xe0   : > { %v302_v49 = vadd.f32 %v301_v47, %v300_v45  ;;  %v597_v50 = vmul.f32 -1.442695, %v295_v48 }
  0xe2   : > { %v598_v51 = vmul.f32 -1.442695, %v302_v49 }
 0x18a   : > { %v399_v13 = vpop.f32.mrf.mxu0 }
 0x18b   : > { %v400_v14 = vadd.f32 %v399_v13, %v325_v12 }
 0x18c   : > { %v619_v15 = vpop.f32.mrf.mxu0 }
 0x18d   : > { %v403_v16 = vmax.f32 %v400_v14, 0.0 }
 0x18f   : > { %621 = vmatpush3.msk.msra.mxu1 %vm410_vm3, %v403_v16 }
 0x190   : > { %623 = vmatmul.mubr.msk.f32.vlgmr.msra.gmra.mxu1 %vm406_vm4, %v404_v17 }
 0x250   : > { %v480_v19 = vpop.f32.mrf.mxu1 }
 0x251   : > { %v481_v20 = vadd.f32 %v480_v19, %v405_v18 }
 0x252   : > { %v624_v21 = vpop.f32.mrf.mxu1 }
 0x253   : > { %v603_v22 = vmul.f32 -1.442695, %v481_v20 }
 0x255   : > { %678 = vpow2.f32 %v603_v22 }
 0x262   : > { %v679_v23 = vpop.eup %678 }
 0x263   : > { %v487_v24 = vadd.f32 1.0, %v679_v23 }
 0x265   : > { %680 = vrcp.f32 %v487_v24 }
 0x266   : > { %682 = vpow2.f32 %v597_v50 }
 0x267   : > { %684 = vpow2.f32 %v598_v51 }
 0x272   : > { %v681_v25 = vpop.eup %680 }
 0x273   : > { %492 = vperm.xlu1 %676, %v681_v25   ;;  %v683_v52 = vpop.eup %682 }
 0x274   : > { %v685_v53 = vpop.eup %684  ;;  %v309_v54 = vadd.f32 1.0, %v683_v52 }
 0x275   : > { %v310_v55 = vadd.f32 1.0, %v685_v53 }
 0x276   : > { %686 = vrcp.f32 %v309_v54 }
 0x277   : > { %688 = vrcp.f32 %v310_v55 }
 0x283   : > { %v687_v56 = vpop.eup %686 }
 0x284   : > { %v689_v57 = vpop.eup %688 }
 0x2ee   : > { %v493_v58 = vpop.permute.xlu1 %492 }
 0x2ef   : > { %v495_v59 = vadd.f32 %v687_v56, %v493_v58  ;;  %v496_v60 = vadd.f32 %v689_v57, %v493_v58 }
 0x2f1   : > { %v499_v61 = vcombine.low %v495_v59, %v496_v60 }
 0x2f3   : > { %v501_v62 = vmul.f32 %v499_v61, %v936_v1 }
 0x2f5   : > { %502 = vst [vmem:[%s269_s14] sm:$0xff] %v501_v62 }
 0x2f6   : > { %731 = shalt.err (!%p728_p10)
}
 0x2f7   : > { %s732_s21 = scalar_lea.hbm %s516_s20, 128  ;;  %s736_s30 = scalar_lea.hbm %s1003_s6, 256 }
 0x2f8   : > { %p733_p2 = scmp.ne.s32.totalorder %s516_s20, %s732_s21  ;;  %p737_p7 = scmp.lt.s32.totalorder %s516_s20, %s1003_s6 }
 0x2f9   : > { %p738_p0 = scmp.lt.s32.totalorder %s736_s30, %s732_s21 }
 0x2fa   : > { %p734_p4 = pnand %p733_p2, %p1014_p12 }
 0x2fb   : > { %p739_p6 = por %p738_p0, %p737_p7 }
 0x2fc   : > { %p735_p9 = pneg %p734_p4 }
 0x2fe   : > { %p740_p11 = pnand %p739_p6, %p735_p9 }
 0x300   : > { %743 = shalt.err (!%p740_p11)
}
 0x301   : > { %627 = dma.vmem_to_hbm [thread:$0]  (%p1014_p12), %s519_s15, 128, %s516_s20, %s504_s9  }
 0x302 PF: > { %s530_s12 = sand.u32 1, %s770_s23   ;;  %p1015_p13 = scmp.ne.s32.totalorder %s1009_s11, 0 }
 0x303   : > { %p1016_p1 = scmp.ge.s32.totalorder %s782_s26, 2  ;;  %s531_s14 = scalar_lea.sflag [#allocation5], %s530_s12 }
 0x305   : > { %p634_p3 = pnand %p1016_p1, %p1015_p13 }
 0x307   : > { %p635_p5 = pneg %p634_p3 }
 0x309   : > { %765 = dma.done.wait (%p635_p5), %s531_s14, 128  }
 0x30a   : > { %767 = vsyncadd (%p635_p5), %s531_s14, 4294967168  ;;  %p21_p8 = scmp.ge.s32.totalorder %s853_s28, 4   ;;  %s1017_s23 = smov %s774_s24 }
 0x30b   : > { %s1018_s24 = smov %s778_s25  ;;  %s1019_s25 = smov %s865_s7 }
 0x30c   : > { %s1020_s26 = smov %s853_s28  ;;  %23 = sbr.rel (!%p21_p8) target bundleno = 8 (0x8), region = 89 }
 0x311   :  { %536 = vsyncpa [#allocation4], 1 }
 0x312   :  { %538 = vsyncpa [#allocation4 + $0x1], 1 }
 0x313   :  { %539 = vsyncpa [#allocation5], 1 }
 0x314   :  { %541 = vsyncpa [#allocation5 + $0x1], 1 }

</bundles_post_ra>
